<compile_context>
chip_gen: v6e
topology: v6e:2x2x1
jax: 0.10.0
libtpu: 0.0.40
codegen_flags: <defaults>
</compile_context>

<pallas_src>
import numpy as np
import jax
import jax.numpy as jnp
from jax import lax
from jax.experimental import pallas as pl
from jax.experimental.pallas import tpu as pltpu

# ----------------------------- configuration --------------------------------
B_BATCH    = 2
ENC_IN     = 4            # E (enc_in)
SEQ_LEN    = 64
LABEL_LEN  = 16
PRED_LEN   = 32
N_HIPPO    = 256          # window_size[0] (hard-coded in the module)
MULTISCALE = (1, 2, 4)
COMPRESSION = 16          # self.version

MODES1   = min(32, PRED_LEN // 2)
SPEC_SEQ = min(PRED_LEN, SEQ_LEN)
MODES2   = min(MODES1, SPEC_SEQ // 2)
MC       = MODES2 * COMPRESSION          # stacked (mode, channel) axis = 256
NUM_SCALES = len(MULTISCALE)

BE = B_BATCH * ENC_IN
assert SEQ_LEN >= PRED_LEN               # selects the `pred_len-1` time-index branch
assert BE % 8 == 0                       # keeps (B*E) sublane aligned


# ------------------------- deterministic parameters -------------------------
def transition_lmu(N):
    Q = np.arange(N, dtype=np.float64)
    R = (2 * Q + 1)[:, None]
    j, i = np.meshgrid(Q, Q)
    A = np.where(i < j, -1.0, (-1.0) ** (i - j + 1)) * R
    B = ((-1.0) ** Q)[:, None] * R
    return A, B


def bilinear_discretize(A, B, dt):
    # scipy.signal.cont2discrete(..., method='bilinear') equivalent
    N = A.shape[0]
    I = np.eye(N)
    M = I - (dt / 2.0) * A
    Ad = np.linalg.solve(M, I + (dt / 2.0) * A)
    Bd = np.linalg.solve(M, dt * B)
    return Ad, Bd.squeeze(-1)


def legendre_eval_matrix(N, dt):
    # scipy.special.eval_legendre(arange(N)[:,None], 1-2*vals).T
    vals = np.arange(0.0, 1.0, dt)
    x = 1.0 - 2.0 * vals
    T = x.shape[0]
    P = np.zeros((T, N), dtype=np.float64)
    P[:, 0] = 1.0
    if N > 1:
        P[:, 1] = x
    for n in range(1, N - 1):
        P[:, n + 1] = ((2 * n + 1) * x * P[:, n] - n * P[:, n - 1]) / (n + 1)
    return P


def build_params(seq_len, pred_len, enc_in, seed=0):
    """Host-side (float64) folding of the ENTIRE linear spectral chain
    (HiPPO recurrence x truncated rfft x W0 x W1 x W2 x irfft@t* x eval_matrix
    x mlp weights, summed over the three multiscale branches) into a single
    dense operator M of shape (seq_len, pred_len)."""
    rng = np.random.default_rng(seed)
    scale = 1.0 / (N_HIPPO * N_HIPPO)
    A_cont, B_cont = transition_lmu(N_HIPPO)
    t_star = pred_len - 1                    # jump_dist == 0, seq_len >= pred_len
    C = COMPRESSION

    # per-scale folded operators, accumulated into one (L, P) matrix
    M_scale = np.zeros((NUM_SCALES, seq_len, pred_len), np.float64)

    for si, ms in enumerate(MULTISCALE):
        dt = 1.0 / pred_len / ms
        Ad, Bd = bilinear_discretize(A_cont, B_cont, dt)
        eval_m = legendre_eval_matrix(N_HIPPO, dt)        # (pred_len*ms, N)
        L_i = min(ms * pred_len, seq_len)

        # impulse response of the recurrence: c_l = sum_{t<=l} x_t * P_{l-t},
        # P_k = B @ (A^T)^k
        PP = np.zeros((L_i, N_HIPPO), np.float64)
        p = Bd.copy()
        AdT = Ad.T
        for k_ in range(L_i):
            PP[k_] = p
            p = p @ AdT

        # truncated rfft bases over the length-L_i time axis
        kk = np.arange(MODES2)
        ll = np.arange(L_i)
        ang = 2.0 * np.pi * np.outer(kk, ll) / L_i
        Fc = np.cos(ang)                                   # (M, L_i)  Re basis
        Fs = -np.sin(ang)                                  # (M, L_i)  Im basis

        # fold recurrence + rfft: Gr[m, t, :] = sum_{l>=t} Fc[m, l] * PP[l-t, :]
        Gr = np.zeros((MODES2, L_i, N_HIPPO), np.float64)
        Gi = np.zeros((MODES2, L_i, N_HIPPO), np.float64)
        for t in range(L_i):
            Gr[:, t, :] = Fc[:, t:] @ PP[:L_i - t]
            Gi[:, t, :] = Fs[:, t:] @ PP[:L_i - t]

        # SpectralConv1d (compression branch) complex weights, scale*rand
        W0 = scale * (rng.random((N_HIPPO, C)) + 1j * rng.random((N_HIPPO, C)))
        W1 = scale * (rng.random((C, C, MODES2)) + 1j * rng.random((C, C, MODES2)))
        W2 = scale * (rng.random((C, N_HIPPO)) + 1j * rng.random((C, N_HIPPO)))

        # pre-apply W0 (N -> C) to the folded DFT operator (complex product)
        Hr = (np.einsum('mtn,nc->mtc', Gr, W0.real)
              - np.einsum('mtn,nc->mtc', Gi, W0.imag))     # (M, L_i, C)
        Hi = (np.einsum('mtn,nc->mtc', Gr, W0.imag)
              + np.einsum('mtn,nc->mtc', Gi, W0.real))
        Hr_stack = np.transpose(Hr, (1, 0, 2)).reshape(L_i, MC)   # (L_i, M*C)
        Hi_stack = np.transpose(Hi, (1, 0, 2)).reshape(L_i, MC)

        # fold W2, irfft(n=L_i) evaluated at t_star, and eval_matrix projection
        ang_t = 2.0 * np.pi * kk * t_star / L_i
        irc = np.where(kk == 0, 1.0, 2.0 * np.cos(ang_t)) / L_i
        irs = np.where(kk == 0, 0.0, -2.0 * np.sin(ang_t)) / L_i
        EmT = eval_m[-pred_len:, :].T                      # (N, P)

        Vr = np.zeros((MC, pred_len), np.float64)
        Vi = np.zeros((MC, pred_len), np.float64)
        for m in range(MODES2):
            sl = slice(m * C, (m + 1) * C)
            Vr[sl, :] = (irc[m] * W2.real + irs[m] * W2.imag) @ EmT
            Vi[sl, :] = (irs[m] * W2.real - irc[m] * W2.imag) @ EmT

        # fold per-mode complex W1 into V (review item 1):
        #   Ur = W1r @ Vr + W1i @ Vi ; Ui = W1r @ Vi - W1i @ Vr   (block-diag)
        Ur = np.zeros((MC, pred_len), np.float64)
        Ui = np.zeros((MC, pred_len), np.float64)
        for m in range(MODES2):
            sl = slice(m * C, (m + 1) * C)
            w1r, w1i = W1.real[:, :, m], W1.imag[:, :, m]
            Ur[sl, :] = w1r @ Vr[sl, :] + w1i @ Vi[sl, :]
            Ui[sl, :] = w1r @ Vi[sl, :] - w1i @ Vr[sl, :]

        # full fold for this scale: (L_i, P); suffix selection x_in = x[:, -L_i:]
        # realized by placing the operator in the trailing rows (zero prefix).
        M_si = Hr_stack @ Ur + Hi_stack @ Ui
        M_scale[si, seq_len - L_i:, :] = M_si

    # nn.Linear(3, 1) over the scales: fold its weights into M, keep the bias
    bound = 1.0 / np.sqrt(3.0)
    mlp_w = rng.uniform(-bound, bound, size=(1, NUM_SCALES))
    mlp_b = rng.uniform(-bound, bound, size=(1, 1))
    M_total = np.einsum('s,slp->lp', mlp_w[0], M_scale)    # (L, P)

    return dict(
        affine_weight=jnp.ones((enc_in,), jnp.float32),
        affine_bias=jnp.zeros((enc_in,), jnp.float32),
        mlp_b=jnp.asarray(mlp_b, jnp.float32),             # (1, 1) -> SMEM
        M=jnp.asarray(M_total, jnp.float32),                # (L, P) single operator
    )


# ------------------------------ fused Pallas kernel ---------------------------
def _film_kernel(x_ref, aw_ref, ab_ref, mb_ref, m_ref, out_ref):
    # 1) RevIN-style normalization (mean/var over the time/lane axis)
    x = x_ref[...]                                           # (BE, L)
    mean = jnp.mean(x, axis=1, keepdims=True)
    xc = x - mean
    var = jnp.mean(xc * xc, axis=1, keepdims=True)           # unbiased=False
    rstd = lax.rsqrt(var + 1e-5)                             # EUP rsqrt, no divide
    std = jnp.sqrt(var + 1e-5)                               # exact for denorm
    aw = aw_ref[...]                                         # (BE, 1)
    ab = ab_ref[...]
    xn = xc * rstd * aw + ab                                 # (BE, L)

    # 2) entire multiscale HiPPO + spectral conv + projection chain folded on
    #    the host into a single (L, P) operator -> ONE MXU dot.
    acc = jnp.dot(xn, m_ref[...], preferred_element_type=jnp.float32)  # (BE, P)

    # 3) mlp bias + inverse normalization (divide kept exact, matches torch)
    y = acc + mb_ref[0, 0]                                   # scalar from SMEM
    y = (y - ab) / (aw + 1e-10)
    out_ref[...] = y * std + mean


def film_forward(x_enc, params):
    # layout: x_enc is (B, L, E); the kernel works on (B*E, L) with time in lanes.
    B, L, E = x_enc.shape
    x_bel = jnp.transpose(x_enc, (0, 2, 1)).reshape(B * E, L).astype(jnp.float32)
    aw = jnp.tile(params['affine_weight'], B).reshape(B * E, 1)
    ab = jnp.tile(params['affine_bias'], B).reshape(B * E, 1)

    out_bep = pl.pallas_call(
        _film_kernel,
        out_shape=jax.ShapeDtypeStruct((B * E, PRED_LEN), jnp.float32),
        in_specs=[
            pl.BlockSpec(memory_space=pltpu.MemorySpace.VMEM),   # x      (BE, L)
            pl.BlockSpec(memory_space=pltpu.MemorySpace.VMEM),   # aw     (BE, 1)
            pl.BlockSpec(memory_space=pltpu.MemorySpace.VMEM),   # ab     (BE, 1)
            pl.BlockSpec(memory_space=pltpu.MemorySpace.SMEM),   # mlp_b  (1, 1)
            pl.BlockSpec(memory_space=pltpu.MemorySpace.VMEM),   # M      (L, P)
        ],
        out_specs=pl.BlockSpec(memory_space=pltpu.MemorySpace.VMEM),
    )(x_bel, aw, ab, params['mlp_b'], params['M'])

    return jnp.transpose(out_bep.reshape(B, E, PRED_LEN), (0, 2, 1))   # (B, P, E)


# ----------------------------------- main ------------------------------------
if __name__ == "__main__":
    key = jax.random.PRNGKey(0)
    k1, k2, k3, k4 = jax.random.split(key, 4)
    x_enc      = jax.random.normal(k1, (B_BATCH, SEQ_LEN, ENC_IN), jnp.float32)
    x_mark_enc = jax.random.normal(k2, (B_BATCH, SEQ_LEN, 4), jnp.float32)          # unused
    x_dec_true = jax.random.normal(k3, (B_BATCH, LABEL_LEN + PRED_LEN, ENC_IN), jnp.float32)  # unused
    x_mark_dec = jax.random.normal(k4, (B_BATCH, LABEL_LEN + PRED_LEN, 4), jnp.float32)       # unused

    params = build_params(SEQ_LEN, PRED_LEN, ENC_IN, seed=0)

    fwd = jax.jit(lambda xe, xme, xd, xmd: film_forward(xe, params))
    out = fwd(x_enc, x_mark_enc, x_dec_true, x_mark_dec)
    out = jax.block_until_ready(out)

    assert out.shape == (B_BATCH, PRED_LEN, ENC_IN), out.shape
    assert bool(jnp.all(jnp.isfinite(out)))
    print("KERNEL_OK")
</pallas_src>

<mosaic_0001>
module attributes {stable_mosaic.version = 11 : i64} {
  func.func @_film_kernel(%arg0: memref<8x64xf32, #tpu.memory_space<vmem>>, %arg1: memref<8x1xf32, #tpu.memory_space<vmem>>, %arg2: memref<8x1xf32, #tpu.memory_space<vmem>>, %arg3: memref<1x1xf32, #tpu.memory_space<smem>>, %arg4: memref<64x32xf32, #tpu.memory_space<vmem>>, %arg5: memref<8x32xf32, #tpu.memory_space<vmem>>) attributes {dimension_semantics = [], scalar_prefetch = 0 : i64, scratch_operands = 0 : i64, tpu.core_type = #tpu.core_type<tc>} {
    %c0 = arith.constant 0 : index
    %c0_0 = arith.constant 0 : index
    %0 = vector.load %arg0[%c0, %c0_0] : memref<8x64xf32, #tpu.memory_space<vmem>>, vector<8x64xf32>
    %cst = arith.constant dense<0.000000e+00> : vector<8xf32>
    %1 = vector.multi_reduction <add>, %0, %cst [1] : vector<8x64xf32> to vector<8xf32>
    %2 = vector.shape_cast %1 : vector<8xf32> to vector<8x1xf32>
    %cst_1 = arith.constant 6.400000e+01 : f32
    %3 = vector.broadcast %cst_1 : f32 to vector<8x1xf32>
    %4 = arith.divf %2, %3 : vector<8x1xf32>
    %5 = vector.broadcast %4 : vector<8x1xf32> to vector<8x64xf32>
    %6 = arith.subf %0, %5 : vector<8x64xf32>
    %7 = arith.mulf %6, %6 : vector<8x64xf32>
    %cst_2 = arith.constant dense<0.000000e+00> : vector<8xf32>
    %8 = vector.multi_reduction <add>, %7, %cst_2 [1] : vector<8x64xf32> to vector<8xf32>
    %9 = vector.shape_cast %8 : vector<8xf32> to vector<8x1xf32>
    %cst_3 = arith.constant 6.400000e+01 : f32
    %10 = vector.broadcast %cst_3 : f32 to vector<8x1xf32>
    %11 = arith.divf %9, %10 : vector<8x1xf32>
    %cst_4 = arith.constant 9.99999974E-6 : f32
    %12 = vector.broadcast %cst_4 : f32 to vector<8x1xf32>
    %13 = arith.addf %11, %12 : vector<8x1xf32>
    %14 = math.rsqrt %13 : vector<8x1xf32>
    %cst_5 = arith.constant 9.99999974E-6 : f32
    %15 = vector.broadcast %cst_5 : f32 to vector<8x1xf32>
    %16 = arith.addf %11, %15 : vector<8x1xf32>
    %17 = math.sqrt %16 : vector<8x1xf32>
    %c0_6 = arith.constant 0 : index
    %c0_7 = arith.constant 0 : index
    %18 = vector.load %arg1[%c0_6, %c0_7] : memref<8x1xf32, #tpu.memory_space<vmem>>, vector<8x1xf32>
    %c0_8 = arith.constant 0 : index
    %c0_9 = arith.constant 0 : index
    %19 = vector.load %arg2[%c0_8, %c0_9] : memref<8x1xf32, #tpu.memory_space<vmem>>, vector<8x1xf32>
    %20 = vector.broadcast %14 : vector<8x1xf32> to vector<8x64xf32>
    %21 = arith.mulf %6, %20 : vector<8x64xf32>
    %22 = vector.broadcast %18 : vector<8x1xf32> to vector<8x64xf32>
    %23 = arith.mulf %21, %22 : vector<8x64xf32>
    %24 = vector.broadcast %19 : vector<8x1xf32> to vector<8x64xf32>
    %25 = arith.addf %23, %24 : vector<8x64xf32>
    %c0_10 = arith.constant 0 : index
    %c0_11 = arith.constant 0 : index
    %26 = vector.load %arg4[%c0_10, %c0_11] : memref<64x32xf32, #tpu.memory_space<vmem>>, vector<64x32xf32>
    %cst_12 = arith.constant dense<0.000000e+00> : vector<8x32xf32>
    %27 = tpu.matmul %25, %26, %cst_12 {dimension_numbers = #tpu.dot_dimension_numbers<[1], [0], [0], [1], [0, 0, 1, 1], [], []>} : vector<8x64xf32>, vector<64x32xf32>, vector<8x32xf32> -> vector<8x32xf32>
    %c0_13 = arith.constant 0 : index
    %c0_14 = arith.constant 0 : index
    %28 = memref.load %arg3[%c0_13, %c0_14] : memref<1x1xf32, #tpu.memory_space<smem>>
    %29 = vector.broadcast %28 : f32 to vector<8x32xf32>
    %30 = arith.addf %27, %29 : vector<8x32xf32>
    %31 = vector.broadcast %19 : vector<8x1xf32> to vector<8x32xf32>
    %32 = arith.subf %30, %31 : vector<8x32xf32>
    %cst_15 = arith.constant 1.000000e-10 : f32
    %33 = vector.broadcast %cst_15 : f32 to vector<8x1xf32>
    %34 = arith.addf %18, %33 : vector<8x1xf32>
    %35 = vector.broadcast %34 : vector<8x1xf32> to vector<8x32xf32>
    %36 = arith.divf %32, %35 : vector<8x32xf32>
    %37 = vector.broadcast %17 : vector<8x1xf32> to vector<8x32xf32>
    %38 = arith.mulf %36, %37 : vector<8x32xf32>
    %39 = vector.broadcast %4 : vector<8x1xf32> to vector<8x32xf32>
    %40 = arith.addf %38, %39 : vector<8x32xf32>
    %c0_16 = arith.constant 0 : index
    %c0_17 = arith.constant 0 : index
    %41 = vector.load %arg5[%c0_16, %c0_17] : memref<8x32xf32, #tpu.memory_space<vmem>>, vector<8x32xf32>
    tpu.vector_store %arg5[%c0_16, %c0_17], %40 {strides = array<i32>} : memref<8x32xf32, #tpu.memory_space<vmem>>, vector<8x32xf32>,
    return
  }
}

</mosaic_0001>

<bundles_post_ra>
// kernel: _lambda_.1
= control target key start
LH: loop header
LB: loop body
LE: loop exit
PB: predicated region body
PF: predicated region fallthrough
CT: control target
= control target key end

     0   :  { %11 = vsyncpa [#allocation4], 0  ;;  %s332_s0 = inlined_call_operand.vmem [shape: f32[8,64], index: 0, kind: input, shape index: {}]   ;;  %s333_s1 = inlined_call_operand.vmem [shape: f32[8,1], index: 1, kind: input, shape index: {}]   ;;  %s334_s2 = inlined_call_operand.vmem [shape: f32[8,1], index: 2, kind: input, shape index: {}]   ;;  %s335_s3 = inlined_call_operand.<no memory space> [shape: f32[1,1], index: 3, kind: input, shape index: {}]   ;;  %s336_s4 = inlined_call_operand.hbm [shape: f32[64,32], index: 4, kind: input, shape index: {}]   ;;  %s337_s5 = inlined_call_operand.hbm [shape: f32[8,32], index: 5, kind: output, shape index: {}]  }
   0x1   :  { %12 = vsyncpa [#allocation5], 0  ;;  %s270_s18 = smov [#allocation3]  }
   0x2   :  { %s26_s19 = sshll.u32 %s270_s18, 4  ;;  %s27_s19 = int_to_ptr.vmem [resolvable:$true] %s26_s19 }
   0x3   :  { %s234_s20 = scalar_lea.vmem %s27_s19, 1024  ;;  %p239_p1 = scmp.lt.s32.totalorder %s27_s19, %s27_s19 }
   0x4   :  { %p235_p0 = scmp.ne.s32.totalorder %s27_s19, %s234_s20  ;;  %p240_p2 = scmp.lt.s32.totalorder %s234_s20, %s234_s20 }
   0x6   :  { %p241_p3 = por %p240_p2, %p239_p1 }
   0x8   :  { %p242_p4 = pnand %p241_p3, %p235_p0 }
   0xa   :  { %245 = shalt.err (!%p242_p4)
}
   0xb   :  { %s271_s21 = smov 128   ;;  %s272_s22 = smov 8  }
   0xc   :  { %32 = dma.hbm_to_vmem [thread:$0]  %s336_s4, 1024, %s27_s19, [#allocation4], %s271_s21, %s271_s21, %s272_s22  }
   0xd   :  { %266 = dma.done.wait [#allocation4], 1024  }
   0xe   :  { %267 = vsyncadd [#allocation4], 4294966272  ;;  %vm37_vm0 = vcmask 523264   ;;  %v36_v0 = vld [vmem:[%s332_s0] sm:$0xff]  ;;  %v273_v3 = vmov 0   ;;  %v80_v10 = vld [vmem:[#allocation3 + $0x38] sm:$0xff]  ;;  %v82_v34 = vstv %s335_s3 }
   0xf   :  { %v38_v1 = vsel %vm37_vm0, %v36_v0, 0.0  ;;  %v58_v2 = vld [vmem:[%s333_s1] sm:$0xff]  ;;  %220 = vset.pattern.permute.xlu1 %v273_v3  ;;  %221 = vset.pattern.permute.xlu0 %v273_v3  ;;  %v274_v11 = vmov 0.0   ;;  %v79_v12 = vld [vmem:[#allocation3 + $0x30] sm:$0xff]  ;;  %v78_v13 = vld [vmem:[#allocation3 + $0x28] sm:$0xff]  ;;  %vm275_vm1 = vmmov 0  }
  0x10   :  { %39 = vadd.xlane.f32.xlu0 %v38_v1  ;;  %63 = vperm.xlu1 %220, %v58_v2   ;;  %v59_v4 = vld [vmem:[%s334_s2] sm:$0xff]  ;;  %v157_v14 = vadd.f32 1e-10, %v58_v2  ;;  %v76_v16 = vld [vmem:[#allocation3 + $0x18] sm:$0xff]  ;;  %v75_v17 = vld [vmem:[#allocation3 + $0x10] sm:$0xff]  ;;  %s276_s2 = smov [#allocation6]  }
  0x11   :  { %194 = vmatprep.subr.mxu0 %v274_v11  ;;  %v77_v15 = vld [vmem:[#allocation3 + $0x20] sm:$0xff]  ;;  %v74_v18 = vld [vmem:[#allocation3 + $0x8] sm:$0xff]  ;;  %210 = vmatprep.mubr.msk.f32.mxu0 %vm275_vm1, %v274_v11  ;;  %s175_s30 = sshll.u32 %s276_s2, 4  ;;  %vm167_vm4 = vcmask 261120   ;;  %s176_s30 = int_to_ptr.vmem [resolvable:$true] %s175_s30 }
  0x12   :  { %195 = vmatpush3.msra.mxu0 %v80_v10  ;;  %v73_v19 = vld [vmem:[#allocation3] sm:$0xff]  ;;  %s246_s6 = scalar_lea.vmem %s176_s30, 128  ;;  %p251_p6 = scmp.lt.s32.totalorder %s176_s30, %s176_s30 }
  0x13   :  { %196 = vmatprep.subr.mxu0 %v274_v11  ;;  %p247_p5 = scmp.ne.s32.totalorder %s176_s30, %s246_s6  ;;  %p252_p7 = scmp.lt.s32.totalorder %s246_s6, %s246_s6 }
  0x14   :  { %69 = vperm.xlu1 %220, %v59_v4   ;;  %197 = vmatpush3.msra.mxu0 %v79_v12 }
  0x15   :  { %198 = vmatprep.subr.mxu0 %v274_v11  ;;  %p253_p8 = por %p252_p7, %p251_p6 }
  0x16   :  { %199 = vmatpush3.msra.mxu0 %v78_v13 }
  0x17   :  { %200 = vmatprep.subr.mxu0 %v274_v11  ;;  %p254_p9 = pnand %p253_p8, %p247_p5 }
  0x18   :  { %201 = vmatpush3.msra.mxu0 %v77_v15 }
  0x19   :  { %202 = vmatprep.subr.mxu0 %v274_v11 }
  0x1a   :  { %203 = vmatpush3.msra.mxu0 %v76_v16 }
  0x1b   :  { %204 = vmatprep.subr.mxu0 %v274_v11 }
  0x1c   :  { %205 = vmatpush3.msra.mxu0 %v75_v17 }
  0x1d   :  { %206 = vmatprep.subr.mxu0 %v274_v11 }
  0x1e   :  { %207 = vmatpush3.msra.mxu0 %v74_v18 }
  0x1f   :  { %208 = vmatprep.subr.mxu0 %v274_v11 }
  0x20   :  { %209 = vmatpush3.msra.mxu0 %v73_v19 }
  0x8b   :  { %v64_v23 = vpop.permute.xlu1 %63 }
  0x8f   :  { %v70_v30 = vpop.permute.xlu1 %69 }
  0x99   :  { %v40_v5 = vpop.xlane.xlu0 %39 }
  0x9a   :  { %v320_v6 = vmul.f32 0.015625, %v40_v5 }
  0x9c   :  { %v43_v7 = vsub.f32 %v36_v0, %v320_v6 }
  0x9e   :  { %v44_v8 = vmul.f32 %v43_v7, %v43_v7 }
  0xa0   :  { %v45_v9 = vsel %vm37_vm0, %v44_v8, 0.0 }
  0xa1   :  { %46 = vadd.xlane.f32.xlu0 %v45_v9 }
  0xb7   :  { %160 = vperm.xlu0 %221, %v157_v14  }
 0x12a   :  { %v47_v20 = vpop.xlane.xlu0 %46 }
 0x12b   :  { %v48_v21 = vmul.f32 0.015625, %v47_v20 }
 0x12d   :  { %v49_v22 = vadd.f32 1e-05, %v48_v21 }
 0x12f   :  { %222 = vrsqrt.f32 %v49_v22  ;;  %vm53_vm2 = vcmp.eq.f32.partialorder %v49_v22, inf  ;;  %v56_v27 = vand.u32 2147483648, %v49_v22  ;;  %vm55_vm3 = vcmp.eq.f32.partialorder %v49_v22, 0.0 }
 0x132   :  { %v161_v33 = vpop.permute.xlu0 %160 }
 0x133   :  { %224 = vrcp.f32 %v161_v33 }
 0x13c   :  { %v223_v24 = vpop.eup %222 }
 0x13d   :  { %v60_v25 = vmul.f32 %v223_v24, %v43_v7  ;;  %v52_v26 = vmul.f32 %v223_v24, %v49_v22 }
 0x13f   :  { %v66_v28 = vmul.f32 %v64_v23, %v60_v25  ;;  %v54_v29 = vsel %vm53_vm2, %v49_v22, %v52_v26 }
 0x140   :  { %v57_v31 = vsel %vm55_vm3, %v56_v27, %v54_v29  ;;  %v225_v37 = vpop.eup %224 }
 0x141   :  { %v72_v32 = vadd.f32 %v70_v30, %v66_v28 }
 0x143   :  { %211 = vmatmul.mubr.msk.f32.vlgmr.msra.gmra.mxu0 %vm37_vm0, %v72_v32 }
 0x203   :  { %v152_v35 = vpop.f32.mrf.mxu0 }
 0x204   :  { %v153_v36 = vadd.f32 %v152_v35, %v82_v34 }
 0x205   :  { %v212_v38 = vpop.f32.mrf.mxu0 }
 0x206   :  { %v156_v39 = vsub.f32 %v153_v36, %v70_v30 }
 0x208   :  { %v164_v40 = vmul.f32 %v225_v37, %v156_v39 }
 0x20a   :  { %v165_v41 = vmul.f32 %v164_v40, %v57_v31 }
 0x20c   :  { %v166_v42 = vadd.f32 %v165_v41, %v320_v6 }
 0x20e   :  { %168 = vst.msk [vmem:[#allocation6] sm:$0xff] %vm167_vm4, %v166_v42 }
 0x20f   :  { %257 = shalt.err (!%p254_p9)
}
 0x210   :  { %178 = dma.vmem_to_hbm [thread:$0]  %s176_s30, 128, %s337_s5, [#allocation5]  }
 0x211   :  { %268 = dma.done.wait [#allocation5], 128  }
 0x212   :  { %269 = vsyncadd [#allocation5], 4294967168 }
 0x213   :  { %182 = vsyncpa [#allocation4], 1 }
 0x214   :  { %183 = vsyncpa [#allocation5], 1 }

</bundles_post_ra>
